<compile_context>
chip_gen: v7x
topology: tpu7x:2x2x1
jax: 0.10.0
libtpu: 0.0.40
codegen_flags: <defaults>
</compile_context>

<pallas_src>
import functools

import jax
import jax.numpy as jnp
from jax import lax
from jax.experimental import pallas as pl
from jax.experimental.pallas import tpu as pltpu


def _round_up(a, b):
    return -(-a // b) * b


def _mp_kernel(x_ref, sel_ref, o_ref, *, k, woc):
    """MaxPool2d(k, stride=k) on a block of `bm` output rows.

    x_ref:   (bm, k*W)        row = the k consecutive input lines (each W wide)
                              feeding one output row (free reshape of NCHW).
    sel_ref: (k*woc, k*woc)   0/1 gather matrix; column j*woc + c selects
                              chunk-local input lane c*k + j.
    o_ref:   (bm, Wo)
    """
    w = x_ref.shape[1] // k
    wo = o_ref.shape[1]
    prec = (lax.Precision.HIGHEST if x_ref.dtype == jnp.float32
            else lax.Precision.DEFAULT)

    # Vertical (H) window: (k-1) contiguous-lane elementwise maxima (VPU).
    v = x_ref[:, 0:w]
    for i in range(1, k):
        v = jnp.maximum(v, x_ref[:, i * w:(i + 1) * w])

    # Horizontal (W) window + stride-k compaction, chunked along the width:
    # per chunk, k per-offset 0/1 gather matmuls (idle MXU) folded into a
    # running max (VPU maxima interleave with MXU result pops).
    n_chunks = -(-wo // woc)
    for c in range(n_chunks):
        c0 = c * woc                      # output-column offset (128-aligned)
        ncol = min(woc, wo - c0)          # valid output columns in this chunk
        vc = v[:, c0 * k:(c0 + ncol) * k]  # aligned, contiguous input lanes
        o = jnp.dot(vc, sel_ref[0:ncol * k, 0:ncol],
                    preferred_element_type=jnp.float32, precision=prec)
        for j in range(1, k):
            o = jnp.maximum(
                o,
                jnp.dot(vc, sel_ref[0:ncol * k, j * woc:j * woc + ncol],
                        preferred_element_type=jnp.float32, precision=prec))
        o_ref[:, c0:c0 + ncol] = o.astype(o_ref.dtype)


def _make_sel(woc, k, dtype):
    """0/1 gather matrix: sel[l, j*woc + c] = 1 iff l == c*k + j."""
    lane = jnp.arange(k * woc)[:, None]
    col = jnp.arange(k * woc)[None, :]
    return (lane == (col % woc) * k + (col // woc)).astype(dtype)


def maxpool2d(x, k=2):
    """nn.MaxPool2d(kernel_size=k, stride=k) forward.  x: (N, C, H, W)."""
    n, c, h, w = x.shape
    ho, wo = h // k, w // k
    hi, wi = ho * k, wo * k
    if ho == 0 or wo == 0:
        return jnp.zeros((n, c, ho, wo), x.dtype)
    if (hi, wi) != (h, w):               # floor mode drops trailing rows/cols
        x = x[:, :, :hi, :wi]

    # Free (contiguous) reshape: one row per output row, its k input lines.
    m = n * c * ho
    x2 = x.reshape(m, k * wi)

    # In-kernel width chunking: <=128 output columns (=> <=128*k contraction
    # lanes) per chunk, so chunk stores are 128-lane aligned and the gather
    # matmul stays off the MXU roofline regardless of W.
    woc = min(128, wo)
    sel = _make_sel(woc, k, x.dtype)

    # Row-block sizing from an explicit VMEM budget: 2x (pipeline) input and
    # output blocks + 2x sel + f32 intermediates (v, chunk o).  ~12 MiB target
    # keeps v5e's 16 MiB default scoped VMEM and v7x's 64 MiB VMEM safe.
    isz = x.dtype.itemsize
    row_align = max(8, 32 // isz)        # sublane packing: f32 8, bf16 16, i8 32
    row_bytes = 2 * (k * wi + wo) * isz + (wi + 2 * woc) * 4
    sel_bytes = 2 * (k * woc) * (k * woc) * isz
    budget = 12 << 20
    bm = (budget - sel_bytes) // max(row_bytes, 1)
    bm = max(row_align, min(bm, 1024) // row_align * row_align)
    if m > 8 * row_align:                # enough rows: >=8 blocks for the
        bm = min(bm, _round_up(pl.cdiv(m, 8), row_align))   # pipeline / 2 TCs
    if bm >= m:
        bm = m                           # single block spanning the row dim
    vmem_limit = int(min(32 << 20, max(16 << 20,
                                       2 * (sel_bytes + bm * row_bytes))))

    out2 = pl.pallas_call(
        functools.partial(_mp_kernel, k=k, woc=woc),
        out_shape=jax.ShapeDtypeStruct((m, wo), x.dtype),
        grid=(pl.cdiv(m, bm),),          # ragged last block: masked writes
        in_specs=[
            pl.BlockSpec((bm, k * wi), lambda i: (i, 0)),
            # sel is grid-invariant (constant index map => no re-DMA per step).
            pl.BlockSpec((k * woc, k * woc), lambda i: (0, 0)),
        ],
        out_specs=pl.BlockSpec((bm, wo), lambda i: (i, 0)),
        compiler_params=pltpu.CompilerParams(
            dimension_semantics=("parallel",),
            vmem_limit_bytes=vmem_limit),
    )(x2, sel)

    return out2.reshape(n, c, ho, wo)


# ------------------------- pure-JAX reference (check) ------------------------

def _ref_maxpool2d(x, k):
    n, c, h, w = x.shape
    ho, wo = h // k, w // k
    xc = x[:, :, :ho * k, :wo * k]
    return jnp.max(xc.reshape(n, c, ho, k, wo, k), axis=(3, 5))


# ---------------------------------- main -------------------------------------

if __name__ == "__main__":
    key = jax.random.PRNGKey(0)
    k1, k2, k3, k4 = jax.random.split(key, 4)

    # Config 1: module default MP(k=2), x = (2, 4, 16, 16).
    x1 = jax.random.normal(k1, (2, 4, 16, 16), jnp.float32)
    out1 = jax.block_until_ready(maxpool2d(x1, k=2))
    ref1 = _ref_maxpool2d(x1, 2)
    assert out1.shape == (2, 4, 8, 8)
    assert jnp.allclose(out1, ref1, atol=1e-5, rtol=1e-5), \
        float(jnp.max(jnp.abs(out1 - ref1)))

    # Config 2: k=2, non-square spatial dims, and a row count (m=126) that
    # exercises the ragged last row block (no wrapper padding).
    x2 = jax.random.normal(k2, (2, 7, 18, 22), jnp.float32)
    out2 = jax.block_until_ready(maxpool2d(x2, k=2))
    ref2 = _ref_maxpool2d(x2, 2)
    assert out2.shape == (2, 7, 9, 11)
    assert jnp.allclose(out2, ref2, atol=1e-5, rtol=1e-5), \
        float(jnp.max(jnp.abs(out2 - ref2)))

    # Config 3: k=4 with floor-mode cropping (H, W not multiples of k).
    x3 = jax.random.normal(k3, (1, 4, 14, 21), jnp.float32)
    out3 = jax.block_until_ready(maxpool2d(x3, k=4))
    ref3 = _ref_maxpool2d(x3, 4)
    assert out3.shape == (1, 4, 3, 5)
    assert jnp.allclose(out3, ref3, atol=1e-5, rtol=1e-5), \
        float(jnp.max(jnp.abs(out3 - ref3)))

    # Config 4: wide rows (Wo > 128) to exercise the in-kernel width chunking,
    # including a ragged final chunk (150 = 128 + 22).
    x4 = jax.random.normal(k4, (1, 2, 4, 300), jnp.float32)
    out4 = jax.block_until_ready(maxpool2d(x4, k=2))
    ref4 = _ref_maxpool2d(x4, 2)
    assert out4.shape == (1, 2, 2, 150)
    assert jnp.allclose(out4, ref4, atol=1e-5, rtol=1e-5), \
        float(jnp.max(jnp.abs(out4 - ref4)))

    print("KERNEL_OK")
</pallas_src>

<mosaic_0001>
module attributes {stable_mosaic.version = 11 : i64} {
  func.func @_mp_kernel(%arg0: i32, %arg1: memref<64x32xf32, #tpu.memory_space<vmem>>, %arg2: memref<16x16xf32, #tpu.memory_space<vmem>>, %arg3: memref<64x8xf32, #tpu.memory_space<vmem>>) attributes {dimension_semantics = [#tpu.dimension_semantics<parallel>], iteration_bounds = array<i64: 1>, scalar_prefetch = 0 : i64, scratch_operands = 0 : i64, tpu.core_type = #tpu.core_type<tc>, window_params = [{transform_indices = @transform_0, window_bounds = array<i64: 64, 32>}, {pipeline_mode = #tpu.pipeline_mode<synchronous>, transform_indices = @transform_1, window_bounds = array<i64: 16, 16>}, {transform_indices = @transform_2, window_bounds = array<i64: 64, 8>}]} {
    %c0 = arith.constant 0 : index
    %c0_0 = arith.constant 0 : index
    %0 = vector.load %arg1[%c0, %c0_0] : memref<64x32xf32, #tpu.memory_space<vmem>>, vector<64x16xf32>
    %c0_1 = arith.constant 0 : index
    %c16 = arith.constant 16 : index
    %1 = vector.load %arg1[%c0_1, %c16] : memref<64x32xf32, #tpu.memory_space<vmem>>, vector<64x16xf32>
    %2 = arith.maximumf %0, %1 : vector<64x16xf32>
    %c0_2 = arith.constant 0 : index
    %c0_3 = arith.constant 0 : index
    %3 = vector.load %arg2[%c0_2, %c0_3] : memref<16x16xf32, #tpu.memory_space<vmem>>, vector<16x8xf32>
    %cst = arith.constant dense<0.000000e+00> : vector<64x8xf32>
    %4 = tpu.matmul %2, %3, %cst {dimension_numbers = #tpu.dot_dimension_numbers<[1], [0], [0], [1], [0, 0, 1, 1], [], []>, precision = #tpu.contract_precision<fp32>} : vector<64x16xf32>, vector<16x8xf32>, vector<64x8xf32> -> vector<64x8xf32>
    %c0_4 = arith.constant 0 : index
    %c8 = arith.constant 8 : index
    %5 = vector.load %arg2[%c0_4, %c8] : memref<16x16xf32, #tpu.memory_space<vmem>>, vector<16x8xf32>
    %cst_5 = arith.constant dense<0.000000e+00> : vector<64x8xf32>
    %6 = tpu.matmul %2, %5, %cst_5 {dimension_numbers = #tpu.dot_dimension_numbers<[1], [0], [0], [1], [0, 0, 1, 1], [], []>, precision = #tpu.contract_precision<fp32>} : vector<64x16xf32>, vector<16x8xf32>, vector<64x8xf32> -> vector<64x8xf32>
    %7 = arith.maximumf %4, %6 : vector<64x8xf32>
    %c0_6 = arith.constant 0 : index
    %c0_7 = arith.constant 0 : index
    %8 = vector.load %arg3[%c0_6, %c0_7] : memref<64x8xf32, #tpu.memory_space<vmem>>, vector<64x8xf32>
    tpu.vector_store %arg3[%c0_6, %c0_7], %7 {strides = array<i32>} : memref<64x8xf32, #tpu.memory_space<vmem>>, vector<64x8xf32>,
    return
  }
  func.func @transform_0(%arg0: i32) -> (i32, i32) {
    %c0_i32 = arith.constant 0 : i32
    %c0_i32_0 = arith.constant 0 : i32
    return %arg0, %c0_i32 : i32, i32
  }
  func.func @transform_1(%arg0: i32) -> (i32, i32) {
    %c0_i32 = arith.constant 0 : i32
    %c0_i32_0 = arith.constant 0 : i32
    %c0_i32_1 = arith.constant 0 : i32
    return %c0_i32, %c0_i32_0 : i32, i32
  }
  func.func @transform_2(%arg0: i32) -> (i32, i32) {
    %c0_i32 = arith.constant 0 : i32
    %c0_i32_0 = arith.constant 0 : i32
    return %arg0, %c0_i32 : i32, i32
  }
}

</mosaic_0001>

<bundles_post_ra>
// kernel: tpu_custom_call.1
= control target key start
LH: loop header
LB: loop body
LE: loop exit
PB: predicated region body
PF: predicated region fallthrough
CT: control target
= control target key end

     0   :  { %s2077_s13 = smov 112   ;;  %s2078_s22 = smov 120   ;;  %vm61_vm0 = vcmask 130048   ;;  %vm1622_vm1 = vcmask 64512   ;;  %s2388_s0 = inlined_call_operand.vmem [shape: f32[64,32], index: 0, kind: input, shape index: {}]   ;;  %s2389_s1 = inlined_call_operand.vmem [shape: f32[16,16], index: 1, kind: input, shape index: {}]   ;;  %s2390_s2 = inlined_call_operand.vmem [shape: f32[64,8], index: 2, kind: output, shape index: {}]  }
   0x1   :  { %v13_v0 = vld [vmem:[%s2388_s0 + $0x10] sm:$0xff]  ;;  %v11_v1 = vld [vmem:[%s2388_s0] sm:$0xff]  ;;  %v60_v2 = vld [vmem:[%s2389_s1 + $0x8] sm:$0xff] }
   0x2   :  { %31 = vrot.lane.b32.xlu1 %v13_v0, %s2077_s13  ;;  %27 = vrot.lane.b32.xlu0 %v11_v1, %s2077_s13  ;;  %v14_v3 = vld [vmem:[%s2388_s0 + $0x18] sm:$0xff]  ;;  %v12_v4 = vld [vmem:[%s2388_s0 + $0x8] sm:$0xff]  ;;  %v90_v5 = vand.u32 4294901760, %v60_v2 }
   0x3   :  { %v59_v6 = vld [vmem:[%s2389_s1] sm:$0xff]  ;;  %v2123_v13 = vld [vmem:[%s2388_s0 + $0x28] sm:$0xff]  ;;  %v2137_v19 = vld [vmem:[%s2388_s0 + $0x38] sm:$0xff] }
   0x4   :  { %v87_v7 = vand.u32 4294901760, %v59_v6  ;;  %v242_v8 = vsub.f32 %v60_v2, %v90_v5  ;;  %v2128_v14 = vld [vmem:[%s2388_s0 + $0x20] sm:$0xff]  ;;  %v2142_v20 = vld [vmem:[%s2388_s0 + $0x30] sm:$0xff] }
   0x6   :  { %33 = vrot.lane.b32.xlu1 %v14_v3, %s2077_s13  ;;  %29 = vrot.lane.b32.xlu0 %v12_v4, %s2077_s13  ;;  %v2116_v9 = vpack.c.bf16 %v90_v5, %v87_v7  ;;  %v235_v10 = vsub.f32 %v59_v6, %v87_v7  ;;  %v243_v12 = vand.u32 4294901760, %v242_v8 }
   0x8   :  { %1948 = vmatprep.subr.bf16.mxu0 %v2116_v9  ;;  %v236_v11 = vand.u32 4294901760, %v235_v10  ;;  %v244_v16 = vsub.f32 %v242_v8, %v243_v12  ;;  %v2151_v22 = vpack.c.bf16 %v242_v8, %v235_v10 }
   0x9   :  { %1950 = vmatpush3.bf16.msra.mxu0 %v2116_v9 }
   0xa   :  { %850 = vrot.lane.b32.xlu1 %v60_v2, %s2078_s22  ;;  %848 = vrot.lane.b32.xlu0 %v59_v6, %s2078_s22  ;;  %v237_v15 = vsub.f32 %v235_v10, %v236_v11  ;;  %v245_v18 = vand.u32 4294901760, %v244_v16  ;;  %v2153_v23 = vpack.c.bf16 %v243_v12, %v236_v11 }
   0xc   :  { %v238_v17 = vand.u32 4294901760, %v237_v15 }
   0xe   :  { %37 = vrot.lane.b32.xlu1 %v2123_v13, %s2077_s13  ;;  %35 = vrot.lane.b32.xlu0 %v2128_v14, %s2077_s13  ;;  %v2144_v21 = vpack.c.bf16 %v245_v18, %v238_v17 }
  0x10   :  { %1952 = vmatprep.subr.bf16.mxu0 %v2144_v21 }
  0x12   :  { %41 = vrot.lane.b32.xlu1 %v2137_v19, %s2077_s13  ;;  %39 = vrot.lane.b32.xlu0 %v2142_v20, %s2077_s13 }
  0x74   :  { %v32_v24 = vpop.permute.xlu1 %31  ;;  %v28_v25 = vpop.permute.xlu0 %27 }
  0x75   :  { %v53_v26 = vmax.f32 %v13_v0, %v32_v24  ;;  %v51_v27 = vmax.f32 %v11_v1, %v28_v25 }
  0x77   :  { %v69_v28 = vsel %vm61_vm0, %v53_v26, 0  ;;  %v63_v29 = vsel %vm61_vm0, %v51_v27, 0 }
  0x78   :  { %v2157_v30 = vand.u32 4294901760, %v69_v28  ;;  %v2159_v31 = vand.u32 4294901760, %v63_v29  ;;  %v34_v32 = vpop.permute.xlu1 %33  ;;  %v30_v33 = vpop.permute.xlu0 %29 }
  0x79   :  { %v54_v34 = vmax.f32 %v14_v3, %v34_v32  ;;  %v52_v35 = vmax.f32 %v12_v4, %v30_v33 }
  0x7a   :  { %v2162_v36 = vsub.f32 %v69_v28, %v2157_v30  ;;  %v2165_v37 = vsub.f32 %v63_v29, %v2159_v31 }
  0x7b   :  { %v72_v38 = vsel %vm61_vm0, %v54_v34, 0  ;;  %v66_v39 = vsel %vm61_vm0, %v52_v35, 0 }
  0x7c   :  { %v2169_v40 = vand.u32 4294901760, %v72_v38  ;;  %v2171_v41 = vand.u32 4294901760, %v66_v39  ;;  %v851_v42 = vpop.permute.xlu1 %850  ;;  %v849_v43 = vpop.permute.xlu0 %848  ;;  %v2174_v44 = vand.u32 4294901760, %v2165_v37  ;;  %v2177_v45 = vand.u32 4294901760, %v2162_v36 }
  0x7d   :  { %v858_v46 = vand.u32 4294901760, %v851_v42  ;;  %v855_v47 = vand.u32 4294901760, %v849_v43 }
  0x7e   :  { %v2180_v48 = vsub.f32 %v72_v38, %v2169_v40  ;;  %v2183_v49 = vsub.f32 %v66_v39, %v2171_v41  ;;  %v156_v50 = vsub.f32 %v2165_v37, %v2174_v44  ;;  %v176_v58 = vsub.f32 %v2162_v36, %v2177_v45 }
  0x7f   :  { %v2187_v51 = vsub.f32 %v851_v42, %v858_v46  ;;  %v2189_v52 = vpack.c.bf16 %v858_v46, %v855_v47  ;;  %v2191_v53 = vsub.f32 %v849_v43, %v855_v47 }
  0x80   :  { %v38_v54 = vpop.permute.xlu1 %37  ;;  %v36_v55 = vpop.permute.xlu0 %35  ;;  %v157_v56 = vand.u32 4294901760, %v156_v50  ;;  %v2194_v57 = vand.u32 4294901760, %v2183_v49  ;;  %v2199_v59 = vand.u32 4294901760, %v2180_v48  ;;  %v177_v12 = vand.u32 4294901760, %v176_v58 }
  0x81   :  { %v1011_v60 = vand.u32 4294901760, %v2187_v51  ;;  %v1004_v61 = vand.u32 4294901760, %v2191_v53  ;;  %v56_v62 = vmax.f32 %v2123_v13, %v38_v54  ;;  %v55_v63 = vmax.f32 %v2128_v14, %v36_v55  ;;  %1972 = vmatprep.subr.bf16.mxu1 %v2189_v52 }
  0x82   :  { %1759 = vmatprep.mubr.f32.mxu0 %v157_v56  ;;  %1974 = vmatpush3.bf16.msra.mxu1 %v2189_v52  ;;  %v166_v0 = vsub.f32 %v2183_v49, %v2194_v57  ;;  %v186_v1 = vsub.f32 %v2180_v48, %v2199_v59  ;;  %v1979_v32 = vpack.c.bf16 %v2187_v51, %v2191_v53 }
  0x83   :  { %v1012_v2 = vsub.f32 %v2187_v51, %v1011_v60  ;;  %v1005_v3 = vsub.f32 %v2191_v53, %v1004_v61  ;;  %v78_v4 = vsel %vm61_vm0, %v56_v62, 0  ;;  %v75_v5 = vsel %vm61_vm0, %v55_v63, 0  ;;  %1855 = vmatprep.mubr.f32.mxu1 %v157_v56 }
  0x84   :  { %v2219_v6 = vand.u32 4294901760, %v78_v4  ;;  %v2221_v7 = vand.u32 4294901760, %v75_v5  ;;  %v42_v8 = vpop.permute.xlu1 %41  ;;  %v40_v10 = vpop.permute.xlu0 %39  ;;  %v167_v11 = vand.u32 4294901760, %v166_v0 }
  0x85   :  { %v58_v13 = vmax.f32 %v2137_v19, %v42_v8  ;;  %v57_v14 = vmax.f32 %v2142_v20, %v40_v10  ;;  %v1006_v15 = vand.u32 4294901760, %v1005_v3  ;;  %v1013_v16 = vand.u32 4294901760, %v1012_v2 }
  0x86   :  { %v2226_v17 = vsub.f32 %v78_v4, %v2219_v6  ;;  %v2229_v18 = vsub.f32 %v75_v5, %v2221_v7  ;;  %1760 = vmatmul.mubr.f32.vlgmr.msra.gmra.mrb[0].mxu0 %v167_v11  ;;  %1856 = vmatmul.mubr.f32.vlgmr.msra.gmra.mrb[0].mxu1 %v167_v11  ;;  %v187_v19 = vand.u32 4294901760, %v186_v1 }
  0x87   :  { %v84_v24 = vsel %vm61_vm0, %v58_v13, 0  ;;  %v81_v25 = vsel %vm61_vm0, %v57_v14, 0  ;;  %1762 = vmatprep.mubr.f32.mxu0 %v177_v12  ;;  %1858 = vmatprep.mubr.f32.mxu1 %v177_v12  ;;  %v1975_v26 = vpack.c.bf16 %v1013_v16, %v1006_v15 }
  0x88   :  { %v2233_v27 = vand.u32 4294901760, %v84_v24  ;;  %v2235_v20 = vand.u32 4294901760, %v81_v25  ;;  %1954 = vmatpush3.bf16.msra.mxu0 %v2144_v21  ;;  %v2239_v28 = vand.u32 4294901760, %v2229_v18  ;;  %v2242_v29 = vand.u32 4294901760, %v2226_v17 }
  0x89   :  { %1976 = vmatprep.subr.bf16.mxu1 %v1975_v26  ;;  %1956 = vmatprep.subr.bf16.mxu0 %v2151_v22 }
  0x8a   :  { %v2248_v33 = vsub.f32 %v84_v24, %v2233_v27  ;;  %v214_v34 = vsub.f32 %v81_v25, %v2235_v20  ;;  %1763 = vmatmul.mubr.f32.gmra.mrb[2].mxu0 %v187_v19  ;;  %1859 = vmatmul.mubr.f32.gmra.mrb[2].mxu1 %v187_v19  ;;  %v196_v21 = vsub.f32 %v2229_v18, %v2239_v28 }
  0x8b   :  { %1978 = vmatpush3.bf16.msra.mxu1 %v1975_v26  ;;  %v206_v35 = vsub.f32 %v2226_v17, %v2242_v29 }
  0x8c   :  { %1980 = vmatprep.subr.bf16.mxu1 %v1979_v32  ;;  %v197_v38 = vand.u32 4294901760, %v196_v21  ;;  %v2255_v39 = vand.u32 4294901760, %v214_v34  ;;  %v2258_v42 = vand.u32 4294901760, %v2248_v33 }
  0x8d   :  { %v207_v43 = vand.u32 4294901760, %v206_v35 }
  0x8e   :  { %1765 = vmatprep.mubr.f32.mxu0 %v197_v38  ;;  %1861 = vmatprep.mubr.f32.mxu1 %v197_v38  ;;  %v216_v46 = vsub.f32 %v214_v34, %v2255_v39  ;;  %v226_v47 = vsub.f32 %v2248_v33, %v2258_v42 }
  0x8f   :  { %1766 = vmatmul.mubr.f32.gmra.mrb[4].mxu0 %v207_v43  ;;  %1862 = vmatmul.mubr.f32.gmra.mrb[4].mxu1 %v207_v43 }
  0x90   :  { %v217_v50 = vand.u32 4294901760, %v216_v46  ;;  %v227_v54 = vand.u32 4294901760, %v226_v47 }
  0x92   :  { %1768 = vmatprep.mubr.f32.mxu0 %v217_v50  ;;  %1864 = vmatprep.mubr.f32.mxu1 %v217_v50 }
  0x93   :  { %1769 = vmatmul.mubr.f32.gmra.mrb[6].mxu0 %v227_v54  ;;  %1865 = vmatmul.mubr.f32.gmra.mrb[6].mxu1 %v227_v54 }
  0x94   :  { %1775 = vmatprep.mubr.f32.mxu0 %v2159_v31  ;;  %1871 = vmatprep.mubr.f32.mxu1 %v2159_v31 }
  0x97   :  { %1776 = vmatmul.mubr.f32.vlgmr.msra.gmra.mrb[0].mxu0 %v2171_v41  ;;  %1872 = vmatmul.mubr.f32.vlgmr.msra.gmra.mrb[0].mxu1 %v2171_v41 }
  0x98   :  { %1982 = vmatpush3.bf16.msra.mxu1 %v1979_v32  ;;  %1778 = vmatprep.mubr.f32.mxu0 %v2157_v30 }
  0x99   :  { %1874 = vmatprep.mubr.f32.mxu1 %v2157_v30  ;;  %1984 = vmatprep.subr.bf16.mxu1 %v2189_v52 }
  0x9a   :  { %1958 = vmatpush3.bf16.msra.mxu0 %v2151_v22  ;;  %v1987_v22 = vpack.c.bf16 %v1011_v60, %v1004_v61 }
  0x9b   :  { %1779 = vmatmul.mubr.f32.gmra.mrb[2].mxu0 %v2169_v40  ;;  %1875 = vmatmul.mubr.f32.gmra.mrb[2].mxu1 %v2169_v40 }
  0x9c   :  { %1781 = vmatprep.mubr.f32.mxu0 %v2221_v7  ;;  %1877 = vmatprep.mubr.f32.mxu1 %v2221_v7 }
  0x9d   :  { %1960 = vmatprep.subr.bf16.mxu0 %v2116_v9 }
  0x9f   :  { %1782 = vmatmul.mubr.f32.gmra.mrb[4].mxu0 %v2219_v6  ;;  %1878 = vmatmul.mubr.f32.gmra.mrb[4].mxu1 %v2219_v6 }
  0xa0   :  { %1784 = vmatprep.mubr.f32.mxu0 %v2235_v20  ;;  %1880 = vmatprep.mubr.f32.mxu1 %v2235_v20 }
  0xa3   :  { %1785 = vmatmul.mubr.f32.gmra.mrb[6].mxu0 %v2233_v27  ;;  %1881 = vmatmul.mubr.f32.gmra.mrb[6].mxu1 %v2233_v27 }
  0xa4   :  { %1791 = vmatprep.mubr.f32.mxu0 %v2165_v37  ;;  %1887 = vmatprep.mubr.f32.mxu1 %v2165_v37 }
  0xa7   :  { %1792 = vmatmul.mubr.f32.vlgmr.msra.gmra.mrb[0].mxu0 %v2183_v49  ;;  %1888 = vmatmul.mubr.f32.vlgmr.msra.gmra.mrb[0].mxu1 %v2183_v49 }
  0xa8   :  { %1986 = vmatpush3.bf16.msra.mxu1 %v2189_v52  ;;  %1794 = vmatprep.mubr.f32.mxu0 %v2162_v36 }
  0xa9   :  { %1890 = vmatprep.mubr.f32.mxu1 %v2162_v36  ;;  %1988 = vmatprep.subr.bf16.mxu1 %v1987_v22 }
  0xaa   :  { %1962 = vmatpush3.bf16.msra.mxu0 %v2116_v9 }
  0xab   :  { %1795 = vmatmul.mubr.f32.gmra.mrb[2].mxu0 %v2180_v48  ;;  %1891 = vmatmul.mubr.f32.gmra.mrb[2].mxu1 %v2180_v48 }
  0xac   :  { %1797 = vmatprep.mubr.f32.mxu0 %v2229_v18  ;;  %1893 = vmatprep.mubr.f32.mxu1 %v2229_v18 }
  0xad   :  { %1964 = vmatprep.subr.bf16.mxu0 %v2153_v23 }
  0xaf   :  { %1798 = vmatmul.mubr.f32.gmra.mrb[4].mxu0 %v2226_v17  ;;  %1894 = vmatmul.mubr.f32.gmra.mrb[4].mxu1 %v2226_v17 }
  0xb0   :  { %1800 = vmatprep.mubr.f32.mxu0 %v214_v34  ;;  %1896 = vmatprep.mubr.f32.mxu1 %v214_v34 }
  0xb3   :  { %1801 = vmatmul.mubr.f32.gmra.mrb[6].mxu0 %v2248_v33  ;;  %1897 = vmatmul.mubr.f32.gmra.mrb[6].mxu1 %v2248_v33 }
  0xb4   :  { %1807 = vmatprep.mubr.f32.mxu0 %v2174_v44  ;;  %1903 = vmatprep.mubr.f32.mxu1 %v2174_v44 }
  0xb7   :  { %1808 = vmatmul.mubr.f32.vlgmr.msra.gmra.mrb[0].mxu0 %v2194_v57  ;;  %1904 = vmatmul.mubr.f32.vlgmr.msra.gmra.mrb[0].mxu1 %v2194_v57 }
  0xb8   :  { %1990 = vmatpush3.bf16.msra.mxu1 %v1987_v22  ;;  %1810 = vmatprep.mubr.f32.mxu0 %v2177_v45 }
  0xb9   :  { %1906 = vmatprep.mubr.f32.mxu1 %v2177_v45  ;;  %1992 = vmatprep.subr.bf16.mxu1 %v2189_v52 }
  0xba   :  { %1966 = vmatpush3.bf16.msra.mxu0 %v2153_v23 }
  0xbb   :  { %1811 = vmatmul.mubr.f32.gmra.mrb[2].mxu0 %v2199_v59  ;;  %1907 = vmatmul.mubr.f32.gmra.mrb[2].mxu1 %v2199_v59 }
  0xbc   :  { %1813 = vmatprep.mubr.f32.mxu0 %v2239_v28  ;;  %1909 = vmatprep.mubr.f32.mxu1 %v2239_v28 }
  0xbd   :  { %1968 = vmatprep.subr.bf16.mxu0 %v2116_v9 }
  0xbf   :  { %1814 = vmatmul.mubr.f32.gmra.mrb[4].mxu0 %v2242_v29  ;;  %1910 = vmatmul.mubr.f32.gmra.mrb[4].mxu1 %v2242_v29 }
  0xc0   :  { %1816 = vmatprep.mubr.f32.mxu0 %v2255_v39  ;;  %1912 = vmatprep.mubr.f32.mxu1 %v2255_v39 }
  0xc3   :  { %1817 = vmatmul.mubr.f32.gmra.mrb[6].mxu0 %v2258_v42  ;;  %1913 = vmatmul.mubr.f32.gmra.mrb[6].mxu1 %v2258_v42 }
  0xc4   :  { %1823 = vmatprep.mubr.f32.mxu0 %v2159_v31  ;;  %1919 = vmatprep.mubr.f32.mxu1 %v2159_v31 }
  0xc7   :  { %1824 = vmatmul.mubr.f32.vlgmr.msra.gmra.mrb[0].mxu0 %v2171_v41  ;;  %1920 = vmatmul.mubr.f32.vlgmr.msra.gmra.mrb[0].mxu1 %v2171_v41 }
  0xc8   :  { %1994 = vmatpush3.bf16.msra.mxu1 %v2189_v52  ;;  %1826 = vmatprep.mubr.f32.mxu0 %v2157_v30 }
  0xc9   :  { %1922 = vmatprep.mubr.f32.mxu1 %v2157_v30  ;;  %1970 = vmatpush3.bf16.msra.mxu0 %v2116_v9 }
  0xcb   :  { %1827 = vmatmul.mubr.f32.gmra.mrb[2].mxu0 %v2169_v40  ;;  %1923 = vmatmul.mubr.f32.gmra.mrb[2].mxu1 %v2169_v40 }
  0xcc   :  { %1829 = vmatprep.mubr.f32.mxu0 %v2221_v7  ;;  %1925 = vmatprep.mubr.f32.mxu1 %v2221_v7 }
  0xcf   :  { %1830 = vmatmul.mubr.f32.gmra.mrb[4].mxu0 %v2219_v6  ;;  %1926 = vmatmul.mubr.f32.gmra.mrb[4].mxu1 %v2219_v6 }
  0xd0   :  { %1832 = vmatprep.mubr.f32.mxu0 %v2235_v20  ;;  %1928 = vmatprep.mubr.f32.mxu1 %v2235_v20 }
  0xd3   :  { %1833 = vmatmul.mubr.f32.gmra.mrb[6].mxu0 %v2233_v27  ;;  %1929 = vmatmul.mubr.f32.gmra.mrb[6].mxu1 %v2233_v27 }
  0xd4   :  { %1839 = vmatprep.mubr.f32.mxu0 %v2159_v31  ;;  %1935 = vmatprep.mubr.f32.mxu1 %v2159_v31 }
  0xd7   :  { %1840 = vmatmul.mubr.f32.vlgmr.msra.gmra.mrb[0].mxu0 %v2171_v41  ;;  %1936 = vmatmul.mubr.f32.vlgmr.msra.gmra.mrb[0].mxu1 %v2171_v41 }
  0xd8   :  { %1842 = vmatprep.mubr.f32.mxu0 %v2157_v30  ;;  %1938 = vmatprep.mubr.f32.mxu1 %v2157_v30 }
  0xdb   :  { %1843 = vmatmul.mubr.f32.gmra.mrb[2].mxu0 %v2169_v40  ;;  %1939 = vmatmul.mubr.f32.gmra.mrb[2].mxu1 %v2169_v40 }
  0xdc   :  { %1845 = vmatprep.mubr.f32.mxu0 %v2221_v7  ;;  %1941 = vmatprep.mubr.f32.mxu1 %v2221_v7 }
  0xdf   :  { %1846 = vmatmul.mubr.f32.gmra.mrb[4].mxu0 %v2219_v6  ;;  %1942 = vmatmul.mubr.f32.gmra.mrb[4].mxu1 %v2219_v6 }
  0xe0   :  { %1848 = vmatprep.mubr.f32.mxu0 %v2235_v20  ;;  %1944 = vmatprep.mubr.f32.mxu1 %v2235_v20 }
  0xe3   :  { %1849 = vmatmul.mubr.f32.gmra.mrb[6].mxu0 %v2233_v27  ;;  %1945 = vmatmul.mubr.f32.gmra.mrb[6].mxu1 %v2233_v27 }
 0x1aa   :  { %v1841_v9 = vpop.f32.mrb[0].mxu0  ;;  %v1937_v23 = vpop.f32.mrb[0].mxu1 }
 0x1ab   :  { %v1615_v30 = vmax.f32 %v1841_v9, %v1937_v23  ;;  %v800_v31 = vpop.f32.mrb[1].mxu0  ;;  %v1568_v36 = vpop.f32.mrb[1].mxu1 }
 0x1ac   :  { %v1614_v37 = vmax.f32 %v800_v31, %v1568_v36 }
 0x1ad   :  { %1624 = vst.msk [vmem:[%s2390_s2 + $0x8] sm:$0xff] %vm1622_vm1, %v1615_v30 }
 0x1ae   :  { %1623 = vst.msk [vmem:[%s2390_s2] sm:$0xff] %vm1622_vm1, %v1614_v37  ;;  %v1844_v40 = vpop.f32.mrb[2].mxu0  ;;  %v1940_v41 = vpop.f32.mrb[2].mxu1 }
 0x1af   :  { %v1617_v44 = vmax.f32 %v1844_v40, %v1940_v41  ;;  %v812_v45 = vpop.f32.mrb[3].mxu0  ;;  %v1580_v48 = vpop.f32.mrb[3].mxu1 }
 0x1b0   :  { %v1616_v49 = vmax.f32 %v812_v45, %v1580_v48 }
 0x1b1   :  { %1626 = vst.msk [vmem:[%s2390_s2 + $0x18] sm:$0xff] %vm1622_vm1, %v1617_v44 }
 0x1b2   :  { %1625 = vst.msk [vmem:[%s2390_s2 + $0x10] sm:$0xff] %vm1622_vm1, %v1616_v49  ;;  %v1847_v51 = vpop.f32.mrb[4].mxu0  ;;  %v1943_v52 = vpop.f32.mrb[4].mxu1 }
 0x1b3   :  { %v1619_v53 = vmax.f32 %v1847_v51, %v1943_v52  ;;  %v824_v55 = vpop.f32.mrb[5].mxu0  ;;  %v1592_v56 = vpop.f32.mrb[5].mxu1 }
 0x1b4   :  { %v1618_v57 = vmax.f32 %v824_v55, %v1592_v56 }
 0x1b5   :  { %1628 = vst.msk [vmem:[%s2390_s2 + $0x28] sm:$0xff] %vm1622_vm1, %v1619_v53 }
 0x1b6   :  { %1627 = vst.msk [vmem:[%s2390_s2 + $0x20] sm:$0xff] %vm1622_vm1, %v1618_v57  ;;  %v1850_v58 = vpop.f32.mrb[6].mxu0  ;;  %v1946_v59 = vpop.f32.mrb[6].mxu1 }
 0x1b7   :  { %v1621_v60 = vmax.f32 %v1850_v58, %v1946_v59  ;;  %v836_v61 = vpop.f32.mrb[7].mxu0  ;;  %v1604_v62 = vpop.f32.mrb[7].mxu1 }
 0x1b8   :  { %v1620_v63 = vmax.f32 %v836_v61, %v1604_v62 }
 0x1b9   :  { %1630 = vst.msk [vmem:[%s2390_s2 + $0x38] sm:$0xff] %vm1622_vm1, %v1621_v60 }
 0x1ba   :  { %1629 = vst.msk [vmem:[%s2390_s2 + $0x30] sm:$0xff] %vm1622_vm1, %v1620_v63 }

</bundles_post_ra>
